<compile_context>
chip_gen: v6e
topology: v6e:2x2x1
jax: 0.10.0
libtpu: 0.0.40
codegen_flags: <defaults>
</compile_context>

<pallas_src>
import functools

import jax
import jax.numpy as jnp
from jax.experimental import pallas as pl
from jax.experimental.pallas import tpu as pltpu

LN_EPS = 1e-5
NEG_INF = -1e30


def _round_up(x, m):
    return ((x + m - 1) // m) * m


# ------------------------------ tiled matmul --------------------------------
def _matmul_kernel(a_ref, b_ref, o_ref, acc_ref):
    @pl.when(pl.program_id(2) == 0)
    def _():
        acc_ref[...] = jnp.zeros_like(acc_ref)

    acc_ref[...] += jnp.dot(a_ref[...], b_ref[...],
                            preferred_element_type=jnp.float32)

    @pl.when(pl.program_id(2) == pl.num_programs(2) - 1)
    def _():
        o_ref[...] = acc_ref[...]


def matmul(a, b):
    """(M,K) @ (K,N) -> (M,N) f32, bf16 operands, tiled + pipelined."""
    M, K = a.shape
    _, N = b.shape
    tm = min(256, _round_up(M, 8))
    tn = min(256, _round_up(N, 128))
    tk = min(512, _round_up(K, 128))
    Mp, Kp, Np = _round_up(M, tm), _round_up(K, tk), _round_up(N, tn)
    a_p = jnp.pad(a, ((0, Mp - M), (0, Kp - K))).astype(jnp.bfloat16)
    b_p = jnp.pad(b, ((0, Kp - K), (0, Np - N))).astype(jnp.bfloat16)
    out = pl.pallas_call(
        _matmul_kernel,
        out_shape=jax.ShapeDtypeStruct((Mp, Np), jnp.float32),
        grid=(Mp // tm, Np // tn, Kp // tk),
        in_specs=[pl.BlockSpec((tm, tk), lambda i, j, k: (i, k)),
                  pl.BlockSpec((tk, tn), lambda i, j, k: (k, j))],
        out_specs=pl.BlockSpec((tm, tn), lambda i, j, k: (i, j)),
        scratch_shapes=[pltpu.VMEM((tm, tn), jnp.float32)],
        compiler_params=pltpu.CompilerParams(
            dimension_semantics=("parallel", "parallel", "arbitrary")),
    )(a_p, b_p)
    return out[:M, :N]


# ---------------------------- tiled LayerNorm --------------------------------
def _ln_kernel(x_ref, w_ref, b_ref, o_ref):
    x = x_ref[...]
    mu = jnp.mean(x, axis=-1, keepdims=True)
    var = jnp.mean(jnp.square(x - mu), axis=-1, keepdims=True)
    o_ref[...] = (x - mu) * jax.lax.rsqrt(var + LN_EPS) * w_ref[...] + b_ref[...]


def layernorm(x, w, b, rows_per_block=512):
    N, D = x.shape
    TR = min(rows_per_block, _round_up(N, 8))
    Np = _round_up(N, TR)
    x_p = jnp.pad(x, ((0, Np - N), (0, 0)))
    out = pl.pallas_call(
        _ln_kernel,
        out_shape=jax.ShapeDtypeStruct((Np, D), jnp.float32),
        grid=(Np // TR,),
        in_specs=[pl.BlockSpec((TR, D), lambda i: (i, 0)),
                  pl.BlockSpec((1, D), lambda i: (0, 0)),
                  pl.BlockSpec((1, D), lambda i: (0, 0))],
        out_specs=pl.BlockSpec((TR, D), lambda i: (i, 0)),
        compiler_params=pltpu.CompilerParams(dimension_semantics=("parallel",)),
    )(x_p, w, b)
    return out[:N]


# ----------------------- fused LayerNorm + projection ------------------------
def _ln_proj_kernel(x_ref, w_ref, b_ref, wp_ref, o_ref):
    x = x_ref[...]
    mu = jnp.mean(x, axis=-1, keepdims=True)
    var = jnp.mean(jnp.square(x - mu), axis=-1, keepdims=True)
    xn = (x - mu) * jax.lax.rsqrt(var + LN_EPS) * w_ref[...] + b_ref[...]
    o_ref[...] = jnp.dot(xn.astype(jnp.bfloat16), wp_ref[...],
                         preferred_element_type=jnp.float32)


def layernorm_proj(x, w, b, wp_bf16, rows_per_block=512):
    """LN(x) @ wp (no bias, as in CLIP projections); fused in one kernel."""
    N, D = x.shape
    P = wp_bf16.shape[1]
    TR = min(rows_per_block, _round_up(N, 8))
    Np = _round_up(N, TR)
    x_p = jnp.pad(x, ((0, Np - N), (0, 0)))
    out = pl.pallas_call(
        _ln_proj_kernel,
        out_shape=jax.ShapeDtypeStruct((Np, P), jnp.float32),
        grid=(Np // TR,),
        in_specs=[pl.BlockSpec((TR, D), lambda i: (i, 0)),
                  pl.BlockSpec((1, D), lambda i: (0, 0)),
                  pl.BlockSpec((1, D), lambda i: (0, 0)),
                  pl.BlockSpec((D, P), lambda i: (0, 0))],
        out_specs=pl.BlockSpec((TR, P), lambda i: (i, 0)),
        compiler_params=pltpu.CompilerParams(dimension_semantics=("parallel",)),
    )(x_p, w, b, wp_bf16)
    return out[:N]


# ------------------------- Transformer block kernel --------------------------
def _block_kernel(x_ref, ln1w, ln1b, wqkv, bqkv, wo, bo,
                  ln2w, ln2b, wfc, bfc, wpr, bpr,
                  o_ref, attn_ref, *, num_heads, causal, valid_len):
    x3 = x_ref[...]                          # (BB, S, D) f32
    BB, S, D = x3.shape
    dh = D // num_heads
    scale = dh ** -0.5

    def ln(v, w, b):
        mu = jnp.mean(v, axis=-1, keepdims=True)
        var = jnp.mean(jnp.square(v - mu), axis=-1, keepdims=True)
        return (v - mu) * jax.lax.rsqrt(var + LN_EPS) * w + b

    # additive mask built in-kernel (no HBM mask traffic)
    use_mask = causal or (valid_len < S)
    if use_mask:
        col = jax.lax.broadcasted_iota(jnp.int32, (S, S), 1)
        mask = jnp.where(col >= valid_len, NEG_INF, 0.0).astype(jnp.float32)
        if causal:
            row = jax.lax.broadcasted_iota(jnp.int32, (S, S), 0)
            mask = jnp.where(col > row, jnp.float32(NEG_INF), mask)

    x = x3.reshape(BB * S, D)

    # --- pre-LN multi-head attention ---
    xn = ln(x, ln1w[...], ln1b[...])
    qkv = jnp.dot(xn.astype(jnp.bfloat16), wqkv[...],
                  preferred_element_type=jnp.float32) + bqkv[...]
    qkv3 = qkv.reshape(BB, S, 3 * D)
    qb = (qkv3[:, :, :D] * scale).astype(jnp.bfloat16)        # fold scale into q
    kb = qkv3[:, :, D:2 * D].astype(jnp.bfloat16)
    vb = qkv3[:, :, 2 * D:].astype(jnp.bfloat16)
    for h in range(num_heads):
        sl = slice(h * dh, (h + 1) * dh)
        s = jnp.einsum('bqd,bkd->bqk', qb[:, :, sl], kb[:, :, sl],
                       preferred_element_type=jnp.float32)    # no explicit k.T
        if use_mask:
            s = s + mask
        s = s - jnp.max(s, axis=-1, keepdims=True)
        p = jnp.exp(s)
        p = p * pl.reciprocal(jnp.sum(p, axis=-1, keepdims=True), approx=True)
        attn_ref[:, :, sl] = jnp.einsum('bqk,bkd->bqd', p.astype(jnp.bfloat16),
                                        vb[:, :, sl],
                                        preferred_element_type=jnp.float32)
    attn = attn_ref[...].reshape(BB * S, D)
    attn = jnp.dot(attn.astype(jnp.bfloat16), wo[...],
                   preferred_element_type=jnp.float32) + bo[...]
    x = x + attn

    # --- pre-LN MLP with QuickGELU (CLIP) ---
    xn2 = ln(x, ln2w[...], ln2b[...])
    h1 = jnp.dot(xn2.astype(jnp.bfloat16), wfc[...],
                 preferred_element_type=jnp.float32) + bfc[...]
    h1 = h1 * jax.nn.sigmoid(1.702 * h1)
    mlp = jnp.dot(h1.astype(jnp.bfloat16), wpr[...],
                  preferred_element_type=jnp.float32) + bpr[...]
    o_ref[...] = (x + mlp).reshape(BB, S, D)


def transformer_block(x, p, num_heads, *, causal, valid_len, batch_block=1):
    B, S, D = x.shape
    BB = batch_block
    assert B % BB == 0
    Dff = p['wfc'].shape[1]
    kernel = functools.partial(_block_kernel, num_heads=num_heads,
                               causal=causal, valid_len=valid_len)

    def w_spec(shape):
        return pl.BlockSpec(shape, lambda i, _s=shape: (0,) * len(_s))

    in_specs = [
        pl.BlockSpec((BB, S, D), lambda i: (i, 0, 0)),
        w_spec((1, D)), w_spec((1, D)),
        w_spec((D, 3 * D)), w_spec((1, 3 * D)),
        w_spec((D, D)), w_spec((1, D)),
        w_spec((1, D)), w_spec((1, D)),
        w_spec((D, Dff)), w_spec((1, Dff)),
        w_spec((Dff, D)), w_spec((1, D)),
    ]
    return pl.pallas_call(
        kernel,
        out_shape=jax.ShapeDtypeStruct((B, S, D), jnp.float32),
        grid=(B // BB,),
        in_specs=in_specs,
        out_specs=pl.BlockSpec((BB, S, D), lambda i: (i, 0, 0)),
        scratch_shapes=[pltpu.VMEM((BB, S, D), jnp.float32)],
        compiler_params=pltpu.CompilerParams(
            dimension_semantics=("parallel",),
            vmem_limit_bytes=64 * 1024 * 1024),
    )(x, p['ln1_w'], p['ln1_b'], p['wqkv'], p['bqkv'], p['wo'], p['bo'],
      p['ln2_w'], p['ln2_b'], p['wfc'], p['bfc'], p['wpr'], p['bpr'])


def _pick_batch_block(B, S):
    """Largest divisor of B with block rows <= ~512 while keeping grid >= 2."""
    target = max(1, 512 // max(S, 1))
    bb = 1
    for cand in range(1, B + 1):
        if B % cand == 0 and cand <= target and (B // cand) >= 2:
            bb = cand
    return bb


# ------------------------------ logits kernel --------------------------------
def _logits_kernel(img_ref, txt_ref, scale_ref, o_ref):
    img = img_ref[...]
    txt = txt_ref[...]
    img = img * jax.lax.rsqrt(jnp.sum(img * img, axis=-1, keepdims=True) + 1e-6)
    txt = txt * jax.lax.rsqrt(jnp.sum(txt * txt, axis=-1, keepdims=True) + 1e-6)
    sims = jax.lax.dot_general(
        img.astype(jnp.bfloat16), txt.astype(jnp.bfloat16),
        dimension_numbers=(((1,), (1,)), ((), ())),     # contract D, no transpose
        preferred_element_type=jnp.float32)
    o_ref[...] = scale_ref[0, 0] * sims


def compute_logits(img_feat, txt_feat, logit_scale):
    B, D = img_feat.shape
    N = txt_feat.shape[0]
    Npad = _round_up(max(N, 128), 128)                   # lane-dense output
    txt_p = jnp.pad(txt_feat, ((0, Npad - N), (0, 0)))
    scale_arr = jnp.reshape(logit_scale, (1, 1)).astype(jnp.float32)
    out = pl.pallas_call(
        _logits_kernel,
        out_shape=jax.ShapeDtypeStruct((B, Npad), jnp.float32),
        grid=(1,),
        in_specs=[pl.BlockSpec((B, D), lambda i: (0, 0)),
                  pl.BlockSpec((Npad, D), lambda i: (0, 0)),
                  pl.BlockSpec((1, 1), lambda i: (0, 0))],
        out_specs=pl.BlockSpec((B, Npad), lambda i: (0, 0)),
    )(img_feat, txt_p, scale_arr)
    return out[:, :N]


# ------------------------- deterministic parameters --------------------------
def _normal(key, shape, std=0.02):
    return std * jax.random.normal(key, shape, jnp.float32)


def init_block_params(key, D, Dff):
    ks = jax.random.split(key, 4)
    return dict(
        ln1_w=jnp.ones((1, D), jnp.float32), ln1_b=jnp.zeros((1, D), jnp.float32),
        wqkv=_normal(ks[0], (D, 3 * D)), bqkv=jnp.zeros((1, 3 * D), jnp.float32),
        wo=_normal(ks[1], (D, D)), bo=jnp.zeros((1, D), jnp.float32),
        ln2_w=jnp.ones((1, D), jnp.float32), ln2_b=jnp.zeros((1, D), jnp.float32),
        wfc=_normal(ks[2], (D, Dff)), bfc=jnp.zeros((1, Dff), jnp.float32),
        wpr=_normal(ks[3], (Dff, D)), bpr=jnp.zeros((1, D), jnp.float32),
    )


def _bf16_block(b):
    out = dict(b)
    for k in ('wqkv', 'wo', 'wfc', 'wpr'):
        out[k] = b[k].astype(jnp.bfloat16)
    return out


def init_vifi_clip_params(key, *, C, patch, H, W, Dv, Dt, Dproj, L, n_cls,
                          vis_layers, text_layers, vis_heads, text_heads):
    gh, gw = H // patch, W // patch
    S_img = gh * gw + 1
    ks = iter(jax.random.split(key, 16 + vis_layers + text_layers))
    p = dict(
        patch_size=patch, vis_heads=vis_heads, text_heads=text_heads,
        # image encoder (CLIP ViT)
        patch_w=_normal(next(ks), (C * patch * patch, Dv)),      # conv1 (no bias)
        class_emb=_normal(next(ks), (1, Dv)),
        pos_emb_vis=_normal(next(ks), (S_img, Dv)),
        ln_pre_w=jnp.ones((1, Dv), jnp.float32), ln_pre_b=jnp.zeros((1, Dv), jnp.float32),
        ln_post_w=jnp.ones((1, Dv), jnp.float32), ln_post_b=jnp.zeros((1, Dv), jnp.float32),
        visual_proj=_normal(next(ks), (Dv, Dproj)),
        visual_blocks=[init_block_params(next(ks), Dv, 4 * Dv) for _ in range(vis_layers)],
        # text encoder (prompt_learner "complete_text_embeddings" path)
        complete_text_embeddings=_normal(next(ks), (n_cls, L, Dt)),
        pos_emb_text=_normal(next(ks), (L, Dt)),
        ln_final_w=jnp.ones((1, Dt), jnp.float32), ln_final_b=jnp.zeros((1, Dt), jnp.float32),
        text_projection=_normal(next(ks), (Dt, Dproj)),
        text_blocks=[init_block_params(next(ks), Dt, 4 * Dt) for _ in range(text_layers)],
        logit_scale=jnp.asarray(jnp.log(1.0 / 0.07), jnp.float32),
    )
    return p


# ------------------------------- forward pass --------------------------------
def vifi_clip_forward(params, image, tokenized_prompts, return_attention=False):
    p = params
    B, T, C, H, W = image.shape
    patch = p['patch_size']

    # prompt_learner(): non-prompt-stage path -> precomputed token embeddings
    prompts = p['complete_text_embeddings']               # (n_cls, L, Dt)
    logit_scale = jnp.exp(p['logit_scale'])

    # bf16 weight views for the MXU (f32 accumulation inside kernels)
    vis_blocks = [_bf16_block(b) for b in p['visual_blocks']]
    txt_blocks = [_bf16_block(b) for b in p['text_blocks']]

    # ---------------- image encoder (CLIP ViT applied per frame) -------------
    frames = image.astype(jnp.float32).reshape(B * T, C, H, W)
    gh, gw = H // patch, W // patch
    x = frames.reshape(B * T, C, gh, patch, gw, patch)
    x = x.transpose(0, 2, 4, 1, 3, 5).reshape(B * T * gh * gw, C * patch * patch)
    x = matmul(x, p['patch_w'])                            # conv1 as tiled matmul
    Dv = x.shape[-1]
    x = x.reshape(B * T, gh * gw, Dv)
    cls = jnp.broadcast_to(p['class_emb'], (B * T, 1, Dv))
    x = jnp.concatenate([cls, x], axis=1)                  # (BT, S_img, Dv)
    x = x + p['pos_emb_vis'][None]
    S_img = x.shape[1]
    x = layernorm(x.reshape(B * T * S_img, Dv), p['ln_pre_w'], p['ln_pre_b'])
    x = x.reshape(B * T, S_img, Dv)
    S_pad = _round_up(S_img, 8)
    if S_pad != S_img:                                     # pad seq; keys masked in-kernel
        x = jnp.pad(x, ((0, 0), (0, S_pad - S_img), (0, 0)))
    bb_vis = _pick_batch_block(B * T, S_pad)
    for blk in vis_blocks:
        x = transformer_block(x, blk, p['vis_heads'], causal=False,
                              valid_len=S_img, batch_block=bb_vis)
    cls_tok = x[:, 0, :]                                   # (BT, Dv)
    img_feat = layernorm_proj(cls_tok, p['ln_post_w'], p['ln_post_b'],
                              p['visual_proj'].astype(jnp.bfloat16))
    img_feat = img_feat.reshape(B, T, -1).mean(axis=1)     # mean over frames (glue)

    # ------------------------------ text encoder ------------------------------
    tx = prompts + p['pos_emb_text'][None]                 # (n_cls, L, Dt)
    n_cls, L, Dt = tx.shape
    L_pad = _round_up(L, 8)
    if L_pad != L:
        tx = jnp.pad(tx, ((0, 0), (0, L_pad - L), (0, 0)))
    for blk in txt_blocks:
        tx = transformer_block(tx, blk, p['text_heads'], causal=True,
                               valid_len=L, batch_block=n_cls)  # all classes in one step
    eot = jnp.argmax(tokenized_prompts, axis=-1)           # EOT token position
    tx_eot = tx[jnp.arange(n_cls), eot]                    # (n_cls, Dt); LN commutes with gather
    txt_feat = layernorm_proj(tx_eot, p['ln_final_w'], p['ln_final_b'],
                              p['text_projection'].astype(jnp.bfloat16))

    # --------------- normalized cosine logits (Pallas kernel) ----------------
    logits = compute_logits(img_feat, txt_feat, logit_scale)

    # TODO(synk): return_attention=True path (per-layer attention maps) not plumbed.
    attns = None
    return {'logits': logits, 'attention': attns}


# ----------------------------------- main -------------------------------------
if __name__ == "__main__":
    key = jax.random.PRNGKey(0)
    k_img, k_tok, k_par = jax.random.split(key, 3)

    # small shapes consistent with the module:
    B, T, C, H, W = 2, 2, 3, 16, 16     # video: batch, frames, NCHW frames
    patch = 8
    Dv, Dt, Dproj = 32, 32, 32
    L = 8                               # context_length
    n_cls = 4

    image = jax.random.normal(k_img, (B, T, C, H, W), jnp.float32)
    tokenized_prompts = jax.random.randint(k_tok, (n_cls, L), 1, 1000, jnp.int32)

    params = init_vifi_clip_params(
        k_par, C=C, patch=patch, H=H, W=W, Dv=Dv, Dt=Dt, Dproj=Dproj,
        L=L, n_cls=n_cls, vis_layers=2, text_layers=2,
        vis_heads=2, text_heads=2)

    out = vifi_clip_forward(params, image, tokenized_prompts, return_attention=False)
    logits = jax.block_until_ready(out['logits'])
    assert logits.shape == (B, n_cls)
    assert bool(jnp.all(jnp.isfinite(logits)))
    print("KERNEL_OK")
</pallas_src>

<mosaic_0001>
module attributes {stable_mosaic.version = 11 : i64} {
  func.func @_matmul_kernel(%arg0: i32, %arg1: i32, %arg2: i32, %arg3: memref<16x256xbf16, #tpu.memory_space<vmem>>, %arg4: memref<256x128xbf16, #tpu.memory_space<vmem>>, %arg5: memref<16x128xf32, #tpu.memory_space<vmem>>, %arg6: memref<16x128xf32, #tpu.memory_space<vmem>>) attributes {dimension_semantics = [#tpu.dimension_semantics<parallel>, #tpu.dimension_semantics<parallel>, #tpu.dimension_semantics<arbitrary>], iteration_bounds = array<i64: 1, 1, 1>, scalar_prefetch = 0 : i64, scratch_operands = 1 : i64, tpu.core_type = #tpu.core_type<tc>, window_params = [{transform_indices = @transform_0, window_bounds = array<i64: 16, 256>}, {transform_indices = @transform_1, window_bounds = array<i64: 256, 128>}, {transform_indices = @transform_2, window_bounds = array<i64: 16, 128>}]} {
    %c0_i32 = arith.constant 0 : i32
    %0 = arith.cmpi eq, %arg2, %c0_i32 : i32
    %1 = arith.extui %0 : i1 to i32
    %c0_i32_0 = arith.constant 0 : i32
    %2 = arith.cmpi ne, %1, %c0_i32_0 : i32
    scf.if %2 {
      %cst_10 = arith.constant 0.000000e+00 : f32
      %12 = vector.broadcast %cst_10 : f32 to vector<16x128xf32>
      %c0_11 = arith.constant 0 : index
      %c0_12 = arith.constant 0 : index
      %13 = vector.load %arg6[%c0_11, %c0_12] : memref<16x128xf32, #tpu.memory_space<vmem>>, vector<16x128xf32>
      tpu.vector_store %arg6[%c0_11, %c0_12], %12 {strides = array<i32>} : memref<16x128xf32, #tpu.memory_space<vmem>>, vector<16x128xf32>,
    } else {
    }
    %c0 = arith.constant 0 : index
    %c0_1 = arith.constant 0 : index
    %3 = vector.load %arg6[%c0, %c0_1] : memref<16x128xf32, #tpu.memory_space<vmem>>, vector<16x128xf32>
    %c0_2 = arith.constant 0 : index
    %c0_3 = arith.constant 0 : index
    %4 = vector.load %arg3[%c0_2, %c0_3] : memref<16x256xbf16, #tpu.memory_space<vmem>>, vector<16x256xbf16>
    %c0_4 = arith.constant 0 : index
    %c0_5 = arith.constant 0 : index
    %5 = vector.load %arg4[%c0_4, %c0_5] : memref<256x128xbf16, #tpu.memory_space<vmem>>, vector<256x128xbf16>
    %cst = arith.constant dense<0.000000e+00> : vector<16x128xf32>
    %6 = tpu.matmul %4, %5, %cst {dimension_numbers = #tpu.dot_dimension_numbers<[1], [0], [0], [1], [0, 0, 1, 1], [], []>} : vector<16x256xbf16>, vector<256x128xbf16>, vector<16x128xf32> -> vector<16x128xf32>
    %7 = arith.addf %3, %6 : vector<16x128xf32>
    %c0_6 = arith.constant 0 : index
    %c0_7 = arith.constant 0 : index
    %8 = vector.load %arg6[%c0_6, %c0_7] : memref<16x128xf32, #tpu.memory_space<vmem>>, vector<16x128xf32>
    tpu.vector_store %arg6[%c0_6, %c0_7], %7 {strides = array<i32>} : memref<16x128xf32, #tpu.memory_space<vmem>>, vector<16x128xf32>,
    %c0_i32_8 = arith.constant 0 : i32
    %9 = arith.cmpi eq, %arg2, %c0_i32_8 : i32
    %10 = arith.extui %9 : i1 to i32
    %c0_i32_9 = arith.constant 0 : i32
    %11 = arith.cmpi ne, %10, %c0_i32_9 : i32
    scf.if %11 {
      %c0_10 = arith.constant 0 : index
      %c0_11 = arith.constant 0 : index
      %12 = vector.load %arg6[%c0_10, %c0_11] : memref<16x128xf32, #tpu.memory_space<vmem>>, vector<16x128xf32>
      %c0_12 = arith.constant 0 : index
      %c0_13 = arith.constant 0 : index
      %13 = vector.load %arg5[%c0_12, %c0_13] : memref<16x128xf32, #tpu.memory_space<vmem>>, vector<16x128xf32>
      tpu.vector_store %arg5[%c0_12, %c0_13], %12 {strides = array<i32>} : memref<16x128xf32, #tpu.memory_space<vmem>>, vector<16x128xf32>,
    } else {
    }
    return
  }
  func.func @transform_0(%arg0: i32, %arg1: i32, %arg2: i32) -> (i32, i32) {
    %c0_i32 = arith.constant 0 : i32
    return %arg0, %arg2 : i32, i32
  }
  func.func @transform_1(%arg0: i32, %arg1: i32, %arg2: i32) -> (i32, i32) {
    %c0_i32 = arith.constant 0 : i32
    return %arg2, %arg1 : i32, i32
  }
  func.func @transform_2(%arg0: i32, %arg1: i32, %arg2: i32) -> (i32, i32) {
    %c0_i32 = arith.constant 0 : i32
    return %arg0, %arg1 : i32, i32
  }
}

</mosaic_0001>

<bundles_post_ra>
// kernel: tpu_custom_call.1
= control target key start
LH: loop header
LB: loop body
LE: loop exit
PB: predicated region body
PF: predicated region fallthrough
CT: control target
= control target key end

     0   :  { %7 = vsyncpa [#allocation4], 0  ;;  %s428_s0 = inlined_call_operand.hbm [shape: bf16[16,256], index: 0, kind: input, shape index: {}]   ;;  %s429_s1 = inlined_call_operand.hbm [shape: bf16[256,128], index: 1, kind: input, shape index: {}]   ;;  %s430_s2 = inlined_call_operand.hbm [shape: f32[16,128], index: 2, kind: output, shape index: {}]  }
   0x1   :  { %8 = vsyncpa [#allocation7], 0 }
   0x2   :  { %9 = vsyncpa [#allocation5], 0  ;;  %s391_s9 = smov [#allocation3]  }
   0x3   :  { %s15_s10 = sshll.u32 %s391_s9, 4  ;;  %s16_s10 = int_to_ptr.vmem [resolvable:$true] %s15_s10 }
   0x4   :  { %s333_s11 = scalar_lea.vmem %s16_s10, 256  ;;  %p338_p1 = scmp.lt.s32.totalorder %s16_s10, %s16_s10 }
   0x5   :  { %p334_p0 = scmp.ne.s32.totalorder %s16_s10, %s333_s11  ;;  %p339_p2 = scmp.lt.s32.totalorder %s333_s11, %s333_s11 }
   0x7   :  { %p340_p3 = por %p339_p2, %p338_p1 }
   0x9   :  { %p341_p4 = pnand %p340_p3, %p334_p0 }
   0xb   :  { %344 = shalt.err (!%p341_p4)
}
   0xc   :  { %s392_s12 = smov 128   ;;  %s393_s13 = smov 8  }
   0xd   :  { %21 = dma.hbm_to_vmem [thread:$0]  %s428_s0, 256, %s16_s10, [#allocation4], %s392_s12, %s392_s12, %s393_s13  }
   0xe   :  { %s394_s16 = smov [#allocation6]  }
   0xf   :  { %s27_s17 = sshll.u32 %s394_s16, 4  ;;  %s28_s17 = int_to_ptr.vmem [resolvable:$true] %s27_s17 }
  0x10   :  { %s353_s18 = scalar_lea.vmem %s28_s17, 2048  ;;  %p358_p6 = scmp.lt.s32.totalorder %s28_s17, %s28_s17 }
  0x11   :  { %p354_p5 = scmp.ne.s32.totalorder %s28_s17, %s353_s18  ;;  %p359_p7 = scmp.lt.s32.totalorder %s353_s18, %s353_s18 }
  0x13   :  { %p360_p8 = por %p359_p7, %p358_p6 }
  0x15   :  { %p361_p9 = pnand %p360_p8, %p354_p5 }
  0x17   :  { %364 = shalt.err (!%p361_p9)
}
  0x18   :  { %s395_s19 = smov 64   ;;  %s396_s20 = smov 4  }
  0x19   :  { %33 = dma.hbm_to_vmem [thread:$0]  %s429_s1, 2048, %s28_s17, [#allocation7], %s395_s19, %s395_s19, %s396_s20  }
  0x1a   :  { %385 = dma.done.wait [#allocation4], 256  }
  0x1b   :  { %386 = vsyncadd [#allocation4], 4294967040 }
  0x1c   :  { %387 = dma.done.wait [#allocation7], 2048  }
  0x1d   :  { %388 = vsyncadd [#allocation7], 4294965248  ;;  %v306_v0 = vld [vmem:[#allocation6 + $0x78] sm:$0xff]   ;;  %v308_v2 = vld [vmem:[#allocation6 + $0x70] sm:$0xff]   ;;  %s397_s0 = smov [#allocation8]  }
  0x1e   :  { %v307_v1 = vld [vmem:[#allocation6 + $0x38] sm:$0xff]   ;;  %277 = vmatprep.subr.bf16.mxu0 %v306_v0  ;;  %v309_v3 = vld [vmem:[#allocation6 + $0x30] sm:$0xff]   ;;  %v310_v4 = vld [vmem:[#allocation6 + $0x68] sm:$0xff]   ;;  %s246_s1 = sshll.u32 %s397_s0, 4  ;;  %s247_s1 = int_to_ptr.vmem [resolvable:$true] %s246_s1 }
  0x1f   :  { %278 = vmatpush3.bf16.msra.mxu0 %v307_v1  ;;  %v311_v5 = vld [vmem:[#allocation6 + $0x28] sm:$0xff]   ;;  %v312_v6 = vld [vmem:[#allocation6 + $0x60] sm:$0xff]   ;;  %v314_v8 = vld [vmem:[#allocation6 + $0x58] sm:$0xff]   ;;  %s365_s23 = scalar_lea.vmem %s247_s1, 256  ;;  %p370_p11 = scmp.lt.s32.totalorder %s247_s1, %s247_s1 }
  0x20   :  { %279 = vmatprep.subr.bf16.mxu0 %v308_v2  ;;  %v313_v7 = vld [vmem:[#allocation6 + $0x20] sm:$0xff]   ;;  %v315_v9 = vld [vmem:[#allocation6 + $0x18] sm:$0xff]   ;;  %v316_v10 = vld [vmem:[#allocation6 + $0x50] sm:$0xff]   ;;  %p366_p10 = scmp.ne.s32.totalorder %s247_s1, %s365_s23  ;;  %p371_p12 = scmp.lt.s32.totalorder %s365_s23, %s365_s23 }
  0x21   :  { %v324_v11 = vld [vmem:[#allocation3 + $0x4] ss:$8 sps:$4 sm:$0xff]   ;;  %v318_v13 = vld [vmem:[#allocation6 + $0x48] sm:$0xff]   ;;  %v320_v15 = vld [vmem:[#allocation6 + $0x40] sm:$0xff]  }
  0x22   :  { %v317_v12 = vld [vmem:[#allocation6 + $0x10] sm:$0xff]   ;;  %221 = vmatprep.mubr.bf16.mxu0 %v324_v11  ;;  %v319_v14 = vld [vmem:[#allocation6 + $0x8] sm:$0xff]   ;;  %v321_v16 = vld [vmem:[#allocation6] sm:$0xff]   ;;  %p372_p13 = por %p371_p12, %p370_p11 }
  0x23   :  { %280 = vmatpush3.bf16.msra.mxu0 %v309_v3  ;;  %v322_v17 = vld [vmem:[#allocation3] ss:$8 sps:$4 sm:$0xff]  }
  0x24   :  { %281 = vmatprep.subr.bf16.mxu0 %v310_v4  ;;  %p373_p0 = pnand %p372_p13, %p366_p10 }
  0x27   :  { %282 = vmatpush3.bf16.msra.mxu0 %v311_v5 }
  0x28   :  { %283 = vmatprep.subr.bf16.mxu0 %v312_v6 }
  0x2b   :  { %284 = vmatpush3.bf16.msra.mxu0 %v313_v7 }
  0x2c   :  { %285 = vmatprep.subr.bf16.mxu0 %v314_v8 }
  0x2f   :  { %286 = vmatpush3.bf16.msra.mxu0 %v315_v9 }
  0x30   :  { %287 = vmatprep.subr.bf16.mxu0 %v316_v10 }
  0x33   :  { %288 = vmatpush3.bf16.msra.mxu0 %v317_v12 }
  0x34   :  { %289 = vmatprep.subr.bf16.mxu0 %v318_v13 }
  0x37   :  { %290 = vmatpush3.bf16.msra.mxu0 %v319_v14 }
  0x38   :  { %291 = vmatprep.subr.bf16.mxu0 %v320_v15 }
  0x3b   :  { %292 = vmatpush3.bf16.msra.mxu0 %v321_v16 }
  0x3e   :  { %222 = vmatmul.mubr.bf16.vlgmr.msra.gmra.mxu0 %v322_v17 }
  0xfe   :  { %v293_v18 = vpop.f32.mrf.mxu0 }
 0x100   :  { %v294_v19 = vpop.f32.mrf.mxu0 }
 0x101   :  { %v295_v20 = vadd.f32 %v294_v19, %v293_v18 }
 0x102   :  { %v296_v21 = vpop.f32.mrf.mxu0 }
 0x103   :  { %239 = vst [vmem:[#allocation8] sm:$0xff] %v295_v20 }
 0x104   :  { %v297_v22 = vpop.f32.mrf.mxu0 }
 0x105   :  { %v298_v23 = vadd.f32 %v297_v22, %v296_v21 }
 0x107   :  { %240 = vst [vmem:[#allocation8 + $0x8] sm:$0xff] %v298_v23 }
 0x108   :  { %376 = shalt.err (!%p373_p0)
}
 0x109   :  { %252 = dma.vmem_to_hbm [thread:$0]  %s247_s1, 256, %s430_s2, [#allocation5], %s392_s12, %s392_s12, %s393_s13  }
 0x10a   :  { %389 = dma.done.wait [#allocation5], 256  }
 0x10b   :  { %390 = vsyncadd [#allocation5], 4294967040 }
 0x10c   :  { %256 = vsyncpa [#allocation4], 1 }
 0x10d   :  { %257 = vsyncpa [#allocation7], 1 }
 0x10e   :  { %258 = vsyncpa [#allocation5], 1 }

</bundles_post_ra>
